<compile_context>
chip_gen: v7x
topology: tpu7x:2x2x1
jax: 0.10.0
libtpu: 0.0.40
codegen_flags: <defaults>
</compile_context>

<pallas_src>
import functools

import jax
import jax.numpy as jnp
import numpy as np
from jax.experimental import pallas as pl
from jax.experimental.pallas import tpu as pltpu


def _round_up(x, m):
    return ((x + m - 1) // m) * m


def _pack_params(params, param_dtype=jnp.float32):
    """Pack [(W [din,dout], b [1,dout]), ...] into one padded 2-D buffer.

    Returns (packed [rows_total, p_cols], layer_meta tuple of (row_off, din_pad, dout_pad)).
    Layer i slab = rows [row_off, row_off + din_pad) for W (zero padded) followed by
    8 rows whose row 0 holds the bias (zero padded).
    """
    din_pads = [_round_up(w.shape[0], 128) for w, _ in params]
    dout_pads = [_round_up(w.shape[1], 128) for w, _ in params]
    p_cols = max(dout_pads)

    slabs = []
    layer_meta = []
    row_off = 0
    for (w, b), dinp, doutp in zip(params, din_pads, dout_pads):
        slab = np.zeros((dinp + 8, p_cols), np.float32)
        slab[: w.shape[0], : w.shape[1]] = np.asarray(w, np.float32)
        slab[dinp, : b.shape[1]] = np.asarray(b, np.float32)[0]
        slabs.append(slab)
        layer_meta.append((row_off, dinp, doutp))
        row_off += dinp + 8

    packed = jnp.asarray(np.concatenate(slabs, axis=0), dtype=param_dtype)
    return packed, tuple(layer_meta)


def _mlp_kernel(layer_meta, x_ref, p_ref, o_ref):
    """Fused MLP: h = x; hidden layers: relu(h @ W + b); last layer: tanh(h @ W + b).

    x_ref:  [TILE_B, d_in_pad]   (f32)
    p_ref:  [rows_total, p_cols] packed weights+biases (f32 or bf16), VMEM-resident
    o_ref:  [TILE_B, d_out_pad]  (f32), lane-dense (d_out_pad % 128 == 0)
    """
    bf16_weights = p_ref.dtype == jnp.bfloat16
    h = x_ref[...].astype(jnp.float32)
    n = len(layer_meta)
    for i, (off, din, dout) in enumerate(layer_meta):
        w = p_ref[off:off + din, :dout]                                  # [din, dout]
        b = p_ref[off + din:off + din + 1, :dout].astype(jnp.float32)    # [1, dout]
        lhs = h.astype(jnp.bfloat16) if bf16_weights else h
        h = jnp.dot(lhs, w, preferred_element_type=jnp.float32) + b
        if i < n - 1:
            h = jnp.maximum(h, 0.0)  # ReLU
            # TODO(synk): nn.Dropout is identity at inference; not modeled here.
        else:
            h = jnp.tanh(h)          # final Tanh
    o_ref[...] = h.astype(o_ref.dtype)


def mlp_forward_pallas(x, packed, layer_meta, act_dim, *, max_tile_b=256):
    """x: [B, D_in] float32; packed/layer_meta from _pack_params. Returns [B, act_dim] f32."""
    B, d_in = x.shape
    d_in_pad = layer_meta[0][1]
    d_out_pad = layer_meta[-1][2]

    tile_b = min(max_tile_b, _round_up(B, 8))
    b_pad = _round_up(B, tile_b)

    x_p = jnp.zeros((b_pad, d_in_pad), jnp.float32)
    x_p = x_p.at[:B, :d_in].set(x.astype(jnp.float32))

    kernel = functools.partial(_mlp_kernel, layer_meta)
    out = pl.pallas_call(
        kernel,
        out_shape=jax.ShapeDtypeStruct((b_pad, d_out_pad), jnp.float32),
        grid=(b_pad // tile_b,),
        in_specs=[
            pl.BlockSpec((tile_b, d_in_pad), lambda i: (i, 0)),
            # Constant block index -> packed params stay resident in VMEM across grid steps.
            pl.BlockSpec(packed.shape, lambda i: (0, 0)),
        ],
        out_specs=pl.BlockSpec((tile_b, d_out_pad), lambda i: (i, 0)),
        compiler_params=pltpu.CompilerParams(dimension_semantics=("parallel",)),
    )(x_p, packed)
    return out[:B, :act_dim]


class MLBehaviorClonningJax:
    """JAX/Pallas port of MLBehaviorClonning: MLP that predicts next action from past states."""

    def __init__(self, state_dim, act_dim, hidden_size, n_layer, dropout=0.1,
                 max_length=1, key=None, param_dtype=jnp.float32):
        self.state_dim = state_dim
        self.act_dim = act_dim
        self.hidden_size = hidden_size
        self.max_length = max_length

        # Linear dims matching the PyTorch nn.Sequential:
        #   Linear(max_length*state_dim, hidden), (n_layer-1) x Linear(hidden, hidden),
        #   Linear(hidden, act_dim)  -> n_layer + 1 linears.
        dims = [max_length * state_dim] + [hidden_size] * n_layer + [act_dim]

        if key is None:
            key = jax.random.PRNGKey(0)
        self.params = []
        for d_in, d_out in zip(dims[:-1], dims[1:]):
            key, kw, kb = jax.random.split(key, 3)
            bound = 1.0 / np.sqrt(d_in)  # PyTorch default nn.Linear init range
            w = jax.random.uniform(kw, (d_in, d_out), jnp.float32, -bound, bound)
            b = jax.random.uniform(kb, (1, d_out), jnp.float32, -bound, bound)
            self.params.append((w, b))

        # Single packed (padded) parameter buffer, built once at init.
        self.packed, self.layer_meta = _pack_params(self.params, param_dtype)

    def forward(self, states, actions=None, rewards=None, attention_mask=None, target_return=None):
        # states: [B, T, state_dim] -> take last max_length steps and flatten.
        states = states[:, -self.max_length:].reshape(states.shape[0], -1)
        acts = mlp_forward_pallas(states, self.packed, self.layer_meta, self.act_dim)
        acts = acts.reshape(states.shape[0], 1, self.act_dim)
        return (None, acts, None)

    def get_action(self, states, actions=None, rewards=None, **kwargs):
        states = states.reshape(1, -1, self.state_dim)
        if states.shape[1] < self.max_length:
            pad = jnp.zeros((1, self.max_length - states.shape[1], self.state_dim), jnp.float32)
            states = jnp.concatenate([pad, states], axis=1)
        states = states.astype(jnp.float32)
        _, acts, _ = self.forward(states, None, None, **kwargs)
        return acts[0, -1]


def _reference_forward(states, params, max_length, act_dim):
    """Pure-JAX reference for correctness check (unpadded f32 math)."""
    x = states[:, -max_length:].reshape(states.shape[0], -1).astype(jnp.float32)
    h = x
    n = len(params)
    for i, (w, b) in enumerate(params):
        h = h @ w + b
        h = jnp.maximum(h, 0.0) if i < n - 1 else jnp.tanh(h)
    return h.reshape(states.shape[0], 1, act_dim)


if __name__ == "__main__":
    # Small, forward-consistent shapes.
    batch, seq_len = 2, 8
    state_dim, act_dim, hidden_size, n_layer, max_length = 16, 8, 32, 2, 4

    key = jax.random.PRNGKey(0)
    key_model, key_states = jax.random.split(key)

    model = MLBehaviorClonningJax(
        state_dim=state_dim,
        act_dim=act_dim,
        hidden_size=hidden_size,
        n_layer=n_layer,
        max_length=max_length,
        key=key_model,
        param_dtype=jnp.float32,  # use jnp.bfloat16 for large configs (halves HBM/VMEM traffic)
    )

    states = jax.random.normal(key_states, (batch, seq_len, state_dim), jnp.float32)

    _, actions, _ = model.forward(states, None, None)
    actions = jax.block_until_ready(actions)

    ref = _reference_forward(states, model.params, max_length, act_dim)
    np.testing.assert_allclose(np.asarray(actions), np.asarray(ref), rtol=1e-5, atol=1e-5)

    assert actions.shape == (batch, 1, act_dim)

    # get_action smoke test (single trajectory, shorter than max_length -> zero-padded).
    a = model.get_action(jax.random.normal(jax.random.PRNGKey(1), (2, state_dim), jnp.float32))
    a = jax.block_until_ready(a)
    assert a.shape == (act_dim,)

    print("KERNEL_OK")
</pallas_src>

<mosaic_0001>
module attributes {stable_mosaic.version = 11 : i64} {
  func.func @_mlp_kernel(%arg0: i32, %arg1: memref<8x128xf32, #tpu.memory_space<vmem>>, %arg2: memref<408x128xf32, #tpu.memory_space<vmem>>, %arg3: memref<8x128xf32, #tpu.memory_space<vmem>>) attributes {dimension_semantics = [#tpu.dimension_semantics<parallel>], iteration_bounds = array<i64: 1>, scalar_prefetch = 0 : i64, scratch_operands = 0 : i64, tpu.core_type = #tpu.core_type<tc>, window_params = [{transform_indices = @transform_0, window_bounds = array<i64: 8, 128>}, {pipeline_mode = #tpu.pipeline_mode<synchronous>, transform_indices = @transform_1, window_bounds = array<i64: 408, 128>}, {transform_indices = @transform_2, window_bounds = array<i64: 8, 128>}]} {
    %c0 = arith.constant 0 : index
    %c0_0 = arith.constant 0 : index
    %0 = vector.load %arg1[%c0, %c0_0] : memref<8x128xf32, #tpu.memory_space<vmem>>, vector<8x128xf32>
    %c0_1 = arith.constant 0 : index
    %c0_2 = arith.constant 0 : index
    %1 = vector.load %arg2[%c0_1, %c0_2] : memref<408x128xf32, #tpu.memory_space<vmem>>, vector<128x128xf32>
    %c128 = arith.constant 128 : index
    %c0_3 = arith.constant 0 : index
    %2 = vector.load %arg2[%c128, %c0_3] : memref<408x128xf32, #tpu.memory_space<vmem>>, vector<1x128xf32>
    %cst = arith.constant dense<0.000000e+00> : vector<8x128xf32>
    %3 = tpu.matmul %0, %1, %cst {dimension_numbers = #tpu.dot_dimension_numbers<[1], [0], [0], [1], [0, 0, 1, 1], [], []>} : vector<8x128xf32>, vector<128x128xf32>, vector<8x128xf32> -> vector<8x128xf32>
    %4 = vector.broadcast %2 : vector<1x128xf32> to vector<8x128xf32>
    %5 = arith.addf %3, %4 : vector<8x128xf32>
    %cst_4 = arith.constant 0.000000e+00 : f32
    %6 = vector.broadcast %cst_4 : f32 to vector<8x128xf32>
    %7 = arith.maximumf %5, %6 : vector<8x128xf32>
    %c136 = arith.constant 136 : index
    %c0_5 = arith.constant 0 : index
    %8 = vector.load %arg2[%c136, %c0_5] : memref<408x128xf32, #tpu.memory_space<vmem>>, vector<128x128xf32>
    %c264 = arith.constant 264 : index
    %c0_6 = arith.constant 0 : index
    %9 = vector.load %arg2[%c264, %c0_6] : memref<408x128xf32, #tpu.memory_space<vmem>>, vector<1x128xf32>
    %cst_7 = arith.constant dense<0.000000e+00> : vector<8x128xf32>
    %10 = tpu.matmul %7, %8, %cst_7 {dimension_numbers = #tpu.dot_dimension_numbers<[1], [0], [0], [1], [0, 0, 1, 1], [], []>} : vector<8x128xf32>, vector<128x128xf32>, vector<8x128xf32> -> vector<8x128xf32>
    %11 = vector.broadcast %9 : vector<1x128xf32> to vector<8x128xf32>
    %12 = arith.addf %10, %11 : vector<8x128xf32>
    %cst_8 = arith.constant 0.000000e+00 : f32
    %13 = vector.broadcast %cst_8 : f32 to vector<8x128xf32>
    %14 = arith.maximumf %12, %13 : vector<8x128xf32>
    %c272 = arith.constant 272 : index
    %c0_9 = arith.constant 0 : index
    %15 = vector.load %arg2[%c272, %c0_9] : memref<408x128xf32, #tpu.memory_space<vmem>>, vector<128x128xf32>
    %c400 = arith.constant 400 : index
    %c0_10 = arith.constant 0 : index
    %16 = vector.load %arg2[%c400, %c0_10] : memref<408x128xf32, #tpu.memory_space<vmem>>, vector<1x128xf32>
    %cst_11 = arith.constant dense<0.000000e+00> : vector<8x128xf32>
    %17 = tpu.matmul %14, %15, %cst_11 {dimension_numbers = #tpu.dot_dimension_numbers<[1], [0], [0], [1], [0, 0, 1, 1], [], []>} : vector<8x128xf32>, vector<128x128xf32>, vector<8x128xf32> -> vector<8x128xf32>
    %18 = vector.broadcast %16 : vector<1x128xf32> to vector<8x128xf32>
    %19 = arith.addf %17, %18 : vector<8x128xf32>
    %20 = math.tanh %19 : vector<8x128xf32>
    %c0_12 = arith.constant 0 : index
    %c0_13 = arith.constant 0 : index
    %21 = vector.load %arg3[%c0_12, %c0_13] : memref<8x128xf32, #tpu.memory_space<vmem>>, vector<8x128xf32>
    tpu.vector_store %arg3[%c0_12, %c0_13], %20 {strides = array<i32>} : memref<8x128xf32, #tpu.memory_space<vmem>>, vector<8x128xf32>,
    return
  }
  func.func @transform_0(%arg0: i32) -> (i32, i32) {
    %c0_i32 = arith.constant 0 : i32
    %c0_i32_0 = arith.constant 0 : i32
    return %arg0, %c0_i32 : i32, i32
  }
  func.func @transform_1(%arg0: i32) -> (i32, i32) {
    %c0_i32 = arith.constant 0 : i32
    %c0_i32_0 = arith.constant 0 : i32
    %c0_i32_1 = arith.constant 0 : i32
    return %c0_i32, %c0_i32_0 : i32, i32
  }
  func.func @transform_2(%arg0: i32) -> (i32, i32) {
    %c0_i32 = arith.constant 0 : i32
    %c0_i32_0 = arith.constant 0 : i32
    return %arg0, %c0_i32 : i32, i32
  }
}

</mosaic_0001>

<bundles_post_ra>
// kernel: tpu_custom_call.1
= control target key start
LH: loop header
LB: loop body
LE: loop exit
PB: predicated region body
PF: predicated region fallthrough
CT: control target
= control target key end

     0   :  { %7 = vsyncpa [#allocation3], 0  ;;  %s741_s0 = inlined_call_operand.hbm [shape: f32[8,128], index: 0, kind: input, shape index: {}]   ;;  %s742_s1 = inlined_call_operand.hbm [shape: f32[408,128], index: 1, kind: input, shape index: {}]   ;;  %s743_s2 = inlined_call_operand.hbm [shape: f32[8,128], index: 2, kind: output, shape index: {}]  }
   0x1   :  { %8 = vsyncpa [#allocation6], 0 }
   0x2   :  { %9 = vsyncpa [#allocation4], 0  ;;  %s645_s9 = smov [#allocation2]   ;;  %s646_s11 = smov [#allocation5]  }
   0x3   :  { %s16_s10 = sshll.u32 %s645_s9, 4  ;;  %s25_s12 = sshll.u32 %s646_s11, 4  ;;  %s17_s10 = int_to_ptr.vmem [resolvable:$true] %s16_s10  ;;  %s668_s12 = int_to_ptr.vmem [resolvable:$true] %s25_s12 }
   0x4   :  { %s573_s15 = scalar_lea.hbm %s741_s0, 128 }
   0x5   :  { %p574_p0 = scmp.ne.s32.totalorder %s741_s0, %s573_s15  ;;  %p577_p1 = scmp.lt.u32.totalorder %s573_s15, %s741_s0 }
   0x7   :  { %p579_p2 = pnand %p577_p1, %p574_p0 }
   0x9   :  { %582 = shalt.err (!%p579_p2)
}
   0xa   :  { %s583_s20 = scalar_lea.vmem %s17_s10, 128  ;;  %p588_p4 = scmp.lt.s32.totalorder %s17_s10, %s17_s10 }
   0xb   :  { %p584_p3 = scmp.ne.s32.totalorder %s17_s10, %s583_s20  ;;  %p589_p5 = scmp.lt.s32.totalorder %s583_s20, %s583_s20 }
   0xd   :  { %p590_p6 = por %p589_p5, %p588_p4 }
   0xf   :  { %p591_p7 = pnand %p590_p6, %p584_p3 }
  0x11   :  { %594 = shalt.err (!%p591_p7)
}
  0x12   :  { %19 = dma.hbm_to_vmem [thread:$0]  %s741_s0, 128, %s17_s10, [#allocation3]  }
  0x13   :  { %s595_s25 = scalar_lea.hbm %s742_s1, 6528 }
  0x14   :  { %p596_p8 = scmp.ne.s32.totalorder %s742_s1, %s595_s25  ;;  %p599_p9 = scmp.lt.u32.totalorder %s595_s25, %s742_s1 }
  0x16   :  { %p601_p10 = pnand %p599_p9, %p596_p8 }
  0x18   :  { %604 = shalt.err (!%p601_p10)
}
  0x19   :  { %s605_s30 = scalar_lea.vmem %s668_s12, 6528  ;;  %p610_p12 = scmp.lt.s32.totalorder %s668_s12, %s668_s12 }
  0x1a   :  { %p606_p11 = scmp.ne.s32.totalorder %s668_s12, %s605_s30  ;;  %p611_p13 = scmp.lt.s32.totalorder %s605_s30, %s605_s30 }
  0x1c   :  { %p612_p0 = por %p611_p13, %p610_p12 }
  0x1e   :  { %p613_p1 = pnand %p612_p0, %p606_p11 }
  0x20   :  { %616 = shalt.err (!%p613_p1)
}
  0x21   :  { %s647_s0 = smov 128   ;;  %s648_s3 = smov 8  }
  0x22   :  { %31 = dma.hbm_to_vmem [thread:$0]  %s742_s1, 6528, %s668_s12, [#allocation6], %s647_s0, %s647_s0, %s648_s3  }
  0x23   :  { %639 = dma.done.wait [#allocation3], 128  }
  0x24   :  { %640 = vsyncadd [#allocation3], 4294967168 }
  0x25   :  { %641 = dma.done.wait [#allocation6], 6528  }
  0x26   :  { %642 = vsyncadd [#allocation6], 4294960768  ;;  %v649_v0 = vmov 0.0|0.0   ;;  %vm650_vm0 = vmmov 0   ;;  %v651_v1 = vmov 0.0   ;;  %v39_v2 = vld [vmem:[#allocation5] sm:$0xff] }
  0x27   :  { %491 = vmatprep.subr.bf16.mxu0 %v649_v0  ;;  %418 = vmatprep.mubr.msk.f32.mxu0 %vm650_vm0, %v651_v1  ;;  %v40_v3 = vld [vmem:[#allocation5 + $0x8] sm:$0xff]  ;;  %v41_v4 = vld [vmem:[#allocation5 + $0x10] sm:$0xff]  ;;  %v42_v6 = vld [vmem:[#allocation5 + $0x18] sm:$0xff]  ;;  %s652_s1 = smov [#allocation7]  }
  0x28   :  { %515 = vmatprep.subr.bf16.mxu1 %v649_v0  ;;  %453 = vmatprep.mubr.msk.f32.mxu1 %vm650_vm0, %v651_v1  ;;  %v492_v5 = vpack.c.bf16 %v40_v3, %v39_v2  ;;  %v495_v7 = vpack.c.bf16 %v42_v6, %v41_v4  ;;  %v43_v8 = vld [vmem:[#allocation5 + $0x20] sm:$0xff]  ;;  %v44_v9 = vld [vmem:[#allocation5 + $0x28] sm:$0xff]  ;;  %v132_v11 = vld [vmem:[#allocation5 + $0x90] sm:$0xff]  ;;  %s322_s6 = sshll.u32 %s652_s1, 4  ;;  %s323_s6 = int_to_ptr.vmem [resolvable:$true] %s322_s6 }
  0x29   :  { %v131_v10 = vld [vmem:[#allocation5 + $0x88] sm:$0xff]  ;;  %v133_v12 = vld [vmem:[#allocation5 + $0x98] sm:$0xff]  ;;  %v134_v13 = vld [vmem:[#allocation5 + $0xa0] sm:$0xff]  ;;  %v498_v14 = vpack.c.bf16 %v44_v9, %v43_v8  ;;  %s617_s7 = scalar_lea.vmem %s323_s6, 128  ;;  %p622_p3 = scmp.lt.s32.totalorder %s323_s6, %s323_s6 }
  0x2a   :  { %493 = vmatpush3.bf16.msra.mxu0 %v492_v5  ;;  %v516_v15 = vpack.c.bf16 %v132_v11, %v131_v10  ;;  %v45_v16 = vld [vmem:[#allocation5 + $0x30] sm:$0xff]  ;;  %v46_v17 = vld [vmem:[#allocation5 + $0x38] sm:$0xff]  ;;  %v519_v18 = vpack.c.bf16 %v134_v13, %v133_v12  ;;  %v135_v19 = vld [vmem:[#allocation5 + $0xa8] sm:$0xff]  ;;  %p618_p2 = scmp.ne.s32.totalorder %s323_s6, %s617_s7  ;;  %p623_p4 = scmp.lt.s32.totalorder %s617_s7, %s617_s7 }
  0x2b   :  { %494 = vmatprep.subr.bf16.mxu0 %v649_v0  ;;  %v136_v20 = vld [vmem:[#allocation5 + $0xb0] sm:$0xff]  ;;  %v501_v21 = vpack.c.bf16 %v46_v17, %v45_v16  ;;  %v47_v22 = vld [vmem:[#allocation5 + $0x40] sm:$0xff]  ;;  %v48_v23 = vld [vmem:[#allocation5 + $0x48] sm:$0xff] }
  0x2c   :  { %517 = vmatpush3.bf16.msra.mxu1 %v516_v15  ;;  %v522_v24 = vpack.c.bf16 %v136_v20, %v135_v19  ;;  %v137_v25 = vld [vmem:[#allocation5 + $0xb8] sm:$0xff]  ;;  %v138_v26 = vld [vmem:[#allocation5 + $0xc0] sm:$0xff]  ;;  %v504_v27 = vpack.c.bf16 %v48_v23, %v47_v22  ;;  %v49_v28 = vld [vmem:[#allocation5 + $0x50] sm:$0xff]  ;;  %p624_p5 = por %p623_p4, %p622_p3 }
  0x2d   :  { %518 = vmatprep.subr.bf16.mxu1 %v649_v0  ;;  %v50_v29 = vld [vmem:[#allocation5 + $0x58] sm:$0xff]  ;;  %v525_v30 = vpack.c.bf16 %v138_v26, %v137_v25  ;;  %v139_v31 = vld [vmem:[#allocation5 + $0xc8] sm:$0xff]  ;;  %v140_v32 = vld [vmem:[#allocation5 + $0xd0] sm:$0xff] }
  0x2e   :  { %496 = vmatpush3.bf16.msra.mxu0 %v495_v7  ;;  %v507_v33 = vpack.c.bf16 %v50_v29, %v49_v28  ;;  %v51_v34 = vld [vmem:[#allocation5 + $0x60] sm:$0xff]  ;;  %v52_v35 = vld [vmem:[#allocation5 + $0x68] sm:$0xff]  ;;  %v528_v36 = vpack.c.bf16 %v140_v32, %v139_v31  ;;  %v141_v37 = vld [vmem:[#allocation5 + $0xd8] sm:$0xff]  ;;  %p625_p6 = pnand %p624_p5, %p618_p2 }
  0x2f   :  { %497 = vmatprep.subr.bf16.mxu0 %v649_v0  ;;  %v142_v38 = vld [vmem:[#allocation5 + $0xe0] sm:$0xff]  ;;  %v510_v39 = vpack.c.bf16 %v52_v35, %v51_v34  ;;  %v53_v40 = vld [vmem:[#allocation5 + $0x70] sm:$0xff]  ;;  %v54_v41 = vld [vmem:[#allocation5 + $0x78] sm:$0xff] }
  0x30   :  { %520 = vmatpush3.bf16.msra.mxu1 %v519_v18  ;;  %v531_v42 = vpack.c.bf16 %v142_v38, %v141_v37  ;;  %v143_v43 = vld [vmem:[#allocation5 + $0xe8] sm:$0xff]  ;;  %v144_v44 = vld [vmem:[#allocation5 + $0xf0] sm:$0xff]  ;;  %v513_v45 = vpack.c.bf16 %v54_v41, %v53_v40  ;;  %v38_v47 = vld [vmem:[#allocation2] sm:$0xff] }
  0x31   :  { %521 = vmatprep.subr.bf16.mxu1 %v649_v0  ;;  %v534_v46 = vpack.c.bf16 %v144_v44, %v143_v43  ;;  %v145_v48 = vld [vmem:[#allocation5 + $0xf8] sm:$0xff]  ;;  %v146_v49 = vld [vmem:[#allocation5 + $0x100] sm:$0xff]  ;;  %v223_v51 = vld [vmem:[#allocation5 + $0x110] sm:$0xff] }
  0x32   :  { %499 = vmatpush3.bf16.msra.mxu0 %v498_v14  ;;  %v537_v50 = vpack.c.bf16 %v146_v49, %v145_v48  ;;  %v224_v52 = vld [vmem:[#allocation5 + $0x118] sm:$0xff]  ;;  %v225_v53 = vld [vmem:[#allocation5 + $0x120] sm:$0xff]  ;;  %v226_v55 = vld [vmem:[#allocation5 + $0x128] sm:$0xff] }
  0x33   :  { %500 = vmatprep.subr.bf16.mxu0 %v649_v0  ;;  %v540_v54 = vpack.c.bf16 %v224_v52, %v223_v51  ;;  %v543_v56 = vpack.c.bf16 %v226_v55, %v225_v53  ;;  %v227_v57 = vld [vmem:[#allocation5 + $0x130] sm:$0xff]  ;;  %v228_v58 = vld [vmem:[#allocation5 + $0x138] sm:$0xff]  ;;  %v229_v60 = vld [vmem:[#allocation5 + $0x140] sm:$0xff] }
  0x34   :  { %523 = vmatpush3.bf16.msra.mxu1 %v522_v24  ;;  %v546_v59 = vpack.c.bf16 %v228_v58, %v227_v57  ;;  %v230_v61 = vld [vmem:[#allocation5 + $0x148] sm:$0xff]  ;;  %v231_v63 = vld [vmem:[#allocation5 + $0x150] sm:$0xff]  ;;  %v233_v3 = vld [vmem:[#allocation5 + $0x160] sm:$0xff] }
  0x35   :  { %524 = vmatprep.subr.bf16.mxu1 %v649_v0  ;;  %v549_v62 = vpack.c.bf16 %v230_v61, %v229_v60  ;;  %v234_v4 = vld [vmem:[#allocation5 + $0x168] sm:$0xff]  ;;  %v235_v6 = vld [vmem:[#allocation5 + $0x170] sm:$0xff]  ;;  %v236_v7 = vld [vmem:[#allocation5 + $0x178] sm:$0xff] }
  0x36   :  { %502 = vmatpush3.bf16.msra.mxu0 %v501_v21  ;;  %v555_v5 = vpack.c.bf16 %v234_v4, %v233_v3  ;;  %v558_v8 = vpack.c.bf16 %v236_v7, %v235_v6  ;;  %v332_v9 = vld [vmem:[#allocation5 + $0x80] ss:$0 sm:$0xff]  ;;  %v238_v15 = vld [vmem:[#allocation5 + $0x188] sm:$0xff]  ;;  %v334_v22 = vld [vmem:[#allocation5 + $0x190] ss:$0 sm:$0xff] }
  0x37   :  { %503 = vmatprep.subr.bf16.mxu0 %v649_v0  ;;  %v237_v14 = vld [vmem:[#allocation5 + $0x180] sm:$0xff]  ;;  %v333_v17 = vld [vmem:[#allocation5 + $0x108] ss:$0 sm:$0xff] }
  0x38   :  { %526 = vmatpush3.bf16.msra.mxu1 %v525_v30  ;;  %v561_v16 = vpack.c.bf16 %v238_v15, %v237_v14 }
  0x39   :  { %527 = vmatprep.subr.bf16.mxu1 %v649_v0 }
  0x3a   :  { %505 = vmatpush3.bf16.msra.mxu0 %v504_v27 }
  0x3b   :  { %506 = vmatprep.subr.bf16.mxu0 %v649_v0 }
  0x3c   :  { %529 = vmatpush3.bf16.msra.mxu1 %v528_v36 }
  0x3d   :  { %530 = vmatprep.subr.bf16.mxu1 %v649_v0 }
  0x3e   :  { %508 = vmatpush3.bf16.msra.mxu0 %v507_v33 }
  0x3f   :  { %509 = vmatprep.subr.bf16.mxu0 %v649_v0 }
  0x40   :  { %532 = vmatpush3.bf16.msra.mxu1 %v531_v42 }
  0x41   :  { %533 = vmatprep.subr.bf16.mxu1 %v649_v0 }
  0x42   :  { %511 = vmatpush3.bf16.msra.mxu0 %v510_v39 }
  0x43   :  { %512 = vmatprep.subr.bf16.mxu0 %v649_v0 }
  0x44   :  { %535 = vmatpush3.bf16.msra.mxu1 %v534_v46 }
  0x45   :  { %536 = vmatprep.subr.bf16.mxu1 %v649_v0 }
  0x46   :  { %514 = vmatpush3.bf16.msra.mxu0 %v513_v45 }
  0x47   :  { %539 = vmatprep.subr.bf16.mxu0 %v649_v0 }
  0x48   :  { %538 = vmatpush3.bf16.msra.mxu1 %v537_v50 }
  0x49   :  { %419 = vmatmul.mubr.f32.vlgmr.msra.gmra.mrb[0].mxu0 %v38_v47 }
  0x4a   :  { %488 = vmatprep.mubr.msk.f32.mxu0 %vm650_vm0, %v651_v1  ;;  %541 = vmatpush3.bf16.msra.mxu0 %v540_v54  ;;  %v232_v1 = vld [vmem:[#allocation5 + $0x158] sm:$0xff] }
  0x4b   :  { %542 = vmatprep.subr.bf16.mxu0 %v649_v0  ;;  %v552_v2 = vpack.c.bf16 %v232_v1, %v231_v63 }
  0x4e   :  { %544 = vmatpush3.bf16.msra.mxu0 %v543_v56 }
  0x4f   :  { %545 = vmatprep.subr.bf16.mxu0 %v649_v0 }
  0x52   :  { %547 = vmatpush3.bf16.msra.mxu0 %v546_v59 }
  0x53   :  { %548 = vmatprep.subr.bf16.mxu0 %v649_v0 }
  0x56   :  { %550 = vmatpush3.bf16.msra.mxu0 %v549_v62 }
  0x57   :  { %551 = vmatprep.subr.bf16.mxu0 %v649_v0 }
  0x5a   :  { %553 = vmatpush3.bf16.msra.mxu0 %v552_v2 }
  0x5b   :  { %554 = vmatprep.subr.bf16.mxu0 %v649_v0 }
  0x5e   :  { %556 = vmatpush3.bf16.msra.mxu0 %v555_v5 }
  0x5f   :  { %557 = vmatprep.subr.bf16.mxu0 %v649_v0 }
  0x62   :  { %559 = vmatpush3.bf16.msra.mxu0 %v558_v8 }
  0x63   :  { %560 = vmatprep.subr.bf16.mxu0 %v649_v0 }
  0x66   :  { %562 = vmatpush3.bf16.msra.mxu0 %v561_v16 }
 0x11c   :  { %v126_v10 = vpop.f32.mrb[0].mxu0 }
 0x11d   :  { %v127_v11 = vadd.f32 %v332_v9, %v126_v10  ;;  %v420_v12 = vpop.f32.mrb[1].mxu0 }
 0x11f   :  { %v130_v13 = vmax.f32 %v127_v11, 0.0 }
 0x121   :  { %454 = vmatmul.mubr.f32.vlgmr.msra.gmra.mrb[0].mxu1 %v130_v13 }
 0x1f4   :  { %v218_v18 = vpop.f32.mrb[0].mxu1 }
 0x1f5   :  { %v219_v19 = vadd.f32 %v333_v17, %v218_v18  ;;  %v455_v20 = vpop.f32.mrb[1].mxu1 }
 0x1f7   :  { %v222_v21 = vmax.f32 %v219_v19, 0.0 }
 0x1f9   :  { %489 = vmatmul.mubr.f32.vlgmr.msra.gmra.mrb[2].mxu0 %v222_v21 }
 0x2cc   :  { %v310_v23 = vpop.f32.mrb[2].mxu0 }
 0x2cd   :  { %v311_v24 = vadd.f32 %v334_v22, %v310_v23  ;;  %v490_v0 = vpop.f32.mrb[3].mxu0 }
 0x2cf   :  { %571 = vtanh.f32 %v311_v24 }
 0x2d9   :  { %v572_v25 = vpop.eup %571 }
 0x2da   :  { %315 = vst [vmem:[#allocation7] sm:$0xff] %v572_v25 }
 0x2db   :  { %628 = shalt.err (!%p625_p6)
}
 0x2dc   :  { %s629_s10 = scalar_lea.hbm %s743_s2, 128 }
 0x2dd   :  { %p630_p7 = scmp.ne.s32.totalorder %s743_s2, %s629_s10  ;;  %p633_p8 = scmp.lt.u32.totalorder %s629_s10, %s743_s2 }
 0x2df   :  { %p635_p9 = pnand %p633_p8, %p630_p7 }
 0x2e1   :  { %638 = shalt.err (!%p635_p9)
}
 0x2e2   :  { %325 = dma.vmem_to_hbm [thread:$0]  %s323_s6, 128, %s743_s2, [#allocation4]  }
 0x2e3   :  { %643 = dma.done.wait [#allocation4], 128  }
 0x2e4   :  { %644 = vsyncadd [#allocation4], 4294967168 }
 0x2e5   :  { %329 = vsyncpa [#allocation3], 1 }
 0x2e6   :  { %330 = vsyncpa [#allocation6], 1 }
 0x2e7   :  { %331 = vsyncpa [#allocation4], 1 }

</bundles_post_ra>
